<compile_context>
chip_gen: v7x
topology: tpu7x:2x2x1
jax: 0.10.0
libtpu: 0.0.40
codegen_flags: <defaults>
</compile_context>

<pallas_src>
import math

import jax
import jax.numpy as jnp
from jax import lax
from jax.experimental import pallas as pl
from jax.experimental.pallas import tpu as pltpu

HIDDEN = 128


def _discriminator_kernel(x_ref, w1_ref, b1_ref, w2_ref, b2_ref, o_ref):
    # ---- Linear 1: cast streamed x tile to bf16 (free VPU filler under the
    #      DMA), MXU matmul with f32 accumulation ----
    x_bf = x_ref[...].astype(jnp.bfloat16)                 # (TB, D) bf16
    h = jnp.dot(x_bf, w1_ref[...], preferred_element_type=jnp.float32)
    h = h + b1_ref[...]                                    # (1, 128) bias bcast
    # ---- LeakyReLU(0.01): single max instead of cmp+select ----
    h = jnp.maximum(h, 0.01 * h)
    # ---- Linear 2, lane-dense: (1,128) . (TB,128)^T -> (1, TB) ----
    y = lax.dot_general(
        w2_ref[...], h,
        dimension_numbers=(((1,), (1,)), ((), ())),
        preferred_element_type=jnp.float32)
    y = y + b2_ref[0, 0]
    # ---- Sigmoid: EUP exp + approximate reciprocal ----
    o_ref[...] = pl.reciprocal(1.0 + jnp.exp(-y), approx=True).astype(o_ref.dtype)


def _round_up(n, m):
    return ((n + m - 1) // m) * m


def discriminator_forward(x, w1, b1, w2, b2, *, tile_b=1024):
    """x: (B, img_dim). w1: (img_dim,128), b1:(1,128), w2:(128,1), b2:(1,1).
    Returns (B, 1) f32."""
    B, D = x.shape
    bytes_x = jnp.dtype(x.dtype).itemsize

    # --- choose batch tile: multiple of 128 (lane-dense out), VMEM-safe,
    #     and >=2 grid steps when possible (v7x megacore) ---
    max_tile_by_vmem = max(128, ((16 << 20) // (2 * D * bytes_x)) // 128 * 128)
    tile_b = min(int(tile_b), max_tile_by_vmem)
    tile_b = max(128, (tile_b // 128) * 128)
    if B <= tile_b:
        if B > 128:
            tile_b = _round_up(pl.cdiv(B, 2), 128)   # split so both TCs get work
        else:
            tile_b = 128
    grid_b = pl.cdiv(B, tile_b)
    padded_b = grid_b * tile_b

    # --- weights: one-time tiny casts (resident in VMEM across the grid) ---
    w1_bf = w1.astype(jnp.bfloat16)                       # (D, 128)
    b1_f = b1.reshape(1, HIDDEN).astype(jnp.float32)      # (1, 128)
    w2_row = w2.reshape(1, HIDDEN).astype(jnp.float32)    # (1, 128)
    b2_s = b2.reshape(1, 1).astype(jnp.float32)           # SMEM scalar

    # --- VMEM budget: Pallas double-buffers every input spec ---
    vmem_needed = (
        2 * tile_b * D * bytes_x      # x tile (native dtype), double-buffered
        + 2 * D * HIDDEN * 2          # W1 bf16 (resident, still 2 buffers)
        + 2 * 2 * HIDDEN * 4          # b1 + w2 row (f32)
        + 2 * tile_b * 4              # (1, tile_b) f32 output, double-buffered
    )
    vmem_limit = int(min(max(vmem_needed + (4 << 20), 8 << 20), 32 << 20))

    cost = pl.CostEstimate(
        flops=2 * B * D * HIDDEN + 2 * B * HIDDEN,
        transcendentals=B,
        bytes_accessed=B * D * bytes_x + D * HIDDEN * 2 + 2 * HIDDEN * 4 + padded_b * 4,
    )

    out_row = pl.pallas_call(
        _discriminator_kernel,
        out_shape=jax.ShapeDtypeStruct((1, padded_b), jnp.float32),
        grid=(grid_b,),
        in_specs=[
            pl.BlockSpec((tile_b, D), lambda i: (i, 0)),          # x tile (streamed)
            pl.BlockSpec((D, HIDDEN), lambda i: (0, 0)),          # W1 resident
            pl.BlockSpec((1, HIDDEN), lambda i: (0, 0)),          # b1 resident
            pl.BlockSpec((1, HIDDEN), lambda i: (0, 0)),          # w2 row resident
            pl.BlockSpec(memory_space=pltpu.MemorySpace.SMEM),    # b2 scalar
        ],
        out_specs=pl.BlockSpec((1, tile_b), lambda i: (0, i)),    # lane-dense out
        compiler_params=pltpu.CompilerParams(
            dimension_semantics=("parallel",),
            vmem_limit_bytes=vmem_limit,
        ),
        cost_estimate=cost,
    )(x, w1_bf, b1_f, w2_row, b2_s)

    # Drop the padded tail (edge-block rows are garbage) and return (B, 1).
    return out_row[0, :B].reshape(B, 1)


def init_params(key, img_dim, hidden=HIDDEN):
    """Deterministic init mimicking nn.Linear's U(-1/sqrt(fan_in), +1/sqrt(fan_in))."""
    k1, k2, k3, k4 = jax.random.split(key, 4)
    bound1 = 1.0 / math.sqrt(img_dim)
    bound2 = 1.0 / math.sqrt(hidden)
    w1 = jax.random.uniform(k1, (img_dim, hidden), jnp.float32, -bound1, bound1)
    b1 = jax.random.uniform(k2, (1, hidden), jnp.float32, -bound1, bound1)
    w2 = jax.random.uniform(k3, (hidden, 1), jnp.float32, -bound2, bound2)
    b2 = jax.random.uniform(k4, (1, 1), jnp.float32, -bound2, bound2)
    return w1, b1, w2, b2


def _reference_forward(x, w1, b1, w2, b2):
    h = x @ w1 + b1
    h = jnp.where(h > 0, h, 0.01 * h)
    y = h @ w2 + b2
    return jax.nn.sigmoid(y)


if __name__ == "__main__":
    key = jax.random.PRNGKey(0)
    k_data, k_params = jax.random.split(key)

    B = 8          # batch
    IMG_DIM = 256  # flattened image dim fed to the discriminator

    x = jax.random.normal(k_data, (B, IMG_DIM), dtype=jnp.float32)
    w1, b1, w2, b2 = init_params(k_params, IMG_DIM)

    out = discriminator_forward(x, w1, b1, w2, b2)
    out = jax.block_until_ready(out)

    ref = _reference_forward(x, w1, b1, w2, b2)
    assert out.shape == (B, 1)
    # bf16 first-layer matmul + approx reciprocal in the sigmoid -> ~1e-2-level
    # absolute error; output lives in [0,1], so a loose abs tol is appropriate.
    assert jnp.allclose(out, ref, atol=2e-2, rtol=0), (out, ref)

    print("KERNEL_OK")
</pallas_src>

<mosaic_0001>
module attributes {stable_mosaic.version = 11 : i64} {
  func.func @_discriminator_kernel(%arg0: i32, %arg1: memref<128x256xf32, #tpu.memory_space<vmem>>, %arg2: memref<256x128xbf16, #tpu.memory_space<vmem>>, %arg3: memref<1x128xf32, #tpu.memory_space<vmem>>, %arg4: memref<1x128xf32, #tpu.memory_space<vmem>>, %arg5: memref<1x1xf32, #tpu.memory_space<smem>>, %arg6: memref<1x128xf32, #tpu.memory_space<vmem>>) attributes {dimension_semantics = [#tpu.dimension_semantics<parallel>], iteration_bounds = array<i64: 1>, scalar_prefetch = 0 : i64, scratch_operands = 0 : i64, tpu.core_type = #tpu.core_type<tc>, window_params = [{transform_indices = @transform_0, window_bounds = array<i64: 128, 256>}, {pipeline_mode = #tpu.pipeline_mode<synchronous>, transform_indices = @transform_1, window_bounds = array<i64: 256, 128>}, {pipeline_mode = #tpu.pipeline_mode<synchronous>, transform_indices = @transform_2, window_bounds = array<i64: 1, 128>}, {pipeline_mode = #tpu.pipeline_mode<synchronous>, transform_indices = @transform_3, window_bounds = array<i64: 1, 128>}, {transform_indices = @transform_4, window_bounds = array<i64: 1, 1>}, {transform_indices = @transform_5, window_bounds = array<i64: 1, 128>}]} {
    %c0 = arith.constant 0 : index
    %c0_0 = arith.constant 0 : index
    %0 = vector.load %arg1[%c0, %c0_0] : memref<128x256xf32, #tpu.memory_space<vmem>>, vector<128x256xf32>
    %1 = arith.truncf %0 : vector<128x256xf32> to vector<128x256xbf16>
    %c0_1 = arith.constant 0 : index
    %c0_2 = arith.constant 0 : index
    %2 = vector.load %arg2[%c0_1, %c0_2] : memref<256x128xbf16, #tpu.memory_space<vmem>>, vector<256x128xbf16>
    %cst = arith.constant dense<0.000000e+00> : vector<128x128xf32>
    %3 = tpu.matmul %1, %2, %cst {dimension_numbers = #tpu.dot_dimension_numbers<[1], [0], [0], [1], [0, 0, 1, 1], [], []>} : vector<128x256xbf16>, vector<256x128xbf16>, vector<128x128xf32> -> vector<128x128xf32>
    %c0_3 = arith.constant 0 : index
    %c0_4 = arith.constant 0 : index
    %4 = vector.load %arg3[%c0_3, %c0_4] : memref<1x128xf32, #tpu.memory_space<vmem>>, vector<1x128xf32>
    %5 = vector.broadcast %4 : vector<1x128xf32> to vector<128x128xf32>
    %6 = arith.addf %3, %5 : vector<128x128xf32>
    %cst_5 = arith.constant 0.00999999977 : f32
    %7 = vector.broadcast %cst_5 : f32 to vector<128x128xf32>
    %8 = arith.mulf %7, %6 : vector<128x128xf32>
    %9 = arith.maximumf %6, %8 : vector<128x128xf32>
    %c0_6 = arith.constant 0 : index
    %c0_7 = arith.constant 0 : index
    %10 = vector.load %arg4[%c0_6, %c0_7] : memref<1x128xf32, #tpu.memory_space<vmem>>, vector<1x128xf32>
    %cst_8 = arith.constant dense<0.000000e+00> : vector<1x128xf32>
    %11 = tpu.matmul %10, %9, %cst_8 {dimension_numbers = #tpu.dot_dimension_numbers<[1], [1], [0], [0], [0, 0, 1, 0], [], []>} : vector<1x128xf32>, vector<128x128xf32>, vector<1x128xf32> -> vector<1x128xf32>
    %c0_9 = arith.constant 0 : index
    %c0_10 = arith.constant 0 : index
    %12 = memref.load %arg5[%c0_9, %c0_10] : memref<1x1xf32, #tpu.memory_space<smem>>
    %13 = vector.broadcast %12 : f32 to vector<1x128xf32>
    %14 = arith.addf %11, %13 : vector<1x128xf32>
    %cst_11 = arith.constant 0.000000e+00 : f32
    %15 = vector.broadcast %cst_11 : f32 to vector<1x128xf32>
    %16 = arith.subf %15, %14 : vector<1x128xf32>
    %17 = math.exp %16 : vector<1x128xf32>
    %cst_12 = arith.constant 1.000000e+00 : f32
    %18 = vector.broadcast %cst_12 : f32 to vector<1x128xf32>
    %19 = arith.addf %18, %17 : vector<1x128xf32>
    %20 = tpu.reciprocal %19 {approx = true} : vector<1x128xf32> -> vector<1x128xf32>
    %c0_13 = arith.constant 0 : index
    %c0_14 = arith.constant 0 : index
    %21 = vector.load %arg6[%c0_13, %c0_14] : memref<1x128xf32, #tpu.memory_space<vmem>>, vector<1x128xf32>
    tpu.vector_store %arg6[%c0_13, %c0_14], %20 {strides = array<i32>} : memref<1x128xf32, #tpu.memory_space<vmem>>, vector<1x128xf32>,
    return
  }
  func.func @transform_0(%arg0: i32) -> (i32, i32) {
    %c0_i32 = arith.constant 0 : i32
    %c0_i32_0 = arith.constant 0 : i32
    return %arg0, %c0_i32 : i32, i32
  }
  func.func @transform_1(%arg0: i32) -> (i32, i32) {
    %c0_i32 = arith.constant 0 : i32
    %c0_i32_0 = arith.constant 0 : i32
    %c0_i32_1 = arith.constant 0 : i32
    return %c0_i32, %c0_i32_0 : i32, i32
  }
  func.func @transform_2(%arg0: i32) -> (i32, i32) {
    %c0_i32 = arith.constant 0 : i32
    %c0_i32_0 = arith.constant 0 : i32
    %c0_i32_1 = arith.constant 0 : i32
    return %c0_i32, %c0_i32_0 : i32, i32
  }
  func.func @transform_3(%arg0: i32) -> (i32, i32) {
    %c0_i32 = arith.constant 0 : i32
    %c0_i32_0 = arith.constant 0 : i32
    %c0_i32_1 = arith.constant 0 : i32
    return %c0_i32, %c0_i32_0 : i32, i32
  }
  func.func @transform_4(%arg0: i32) -> (i32, i32) {
    %c0_i32 = arith.constant 0 : i32
    %c0_i32_0 = arith.constant 0 : i32
    %c0_i32_1 = arith.constant 0 : i32
    return %c0_i32, %c0_i32_0 : i32, i32
  }
  func.func @transform_5(%arg0: i32) -> (i32, i32) {
    %c0_i32 = arith.constant 0 : i32
    %c0_i32_0 = arith.constant 0 : i32
    return %c0_i32, %arg0 : i32, i32
  }
}

</mosaic_0001>

<bundles_post_ra>
// kernel: tpu_custom_call.1
= control target key start
LH: loop header
LB: loop body
LE: loop exit
PB: predicated region body
PF: predicated region fallthrough
CT: control target
= control target key end

     0   :  { %11 = vsyncpa [#allocation4], 0  ;;  %s828_s0 = inlined_call_operand.hbm [shape: f32[8,256], index: 0, kind: input, shape index: {}]   ;;  %s829_s1 = inlined_call_operand.hbm [shape: bf16[256,128], index: 1, kind: input, shape index: {}]   ;;  %s830_s2 = inlined_call_operand.vmem [shape: f32[1,128], index: 2, kind: input, shape index: {}]   ;;  %s831_s3 = inlined_call_operand.vmem [shape: f32[1,128], index: 3, kind: input, shape index: {}]   ;;  %s832_s4 = inlined_call_operand.<no memory space> [shape: f32[1,1], index: 4, kind: input, shape index: {}]   ;;  %s833_s5 = inlined_call_operand.hbm [shape: f32[1,128], index: 5, kind: output, shape index: {}]  }
   0x1   :  { %12 = vsyncpa [#allocation7], 0 }
   0x2   :  { %13 = vsyncpa [#allocation5], 0 }
   0x3   :  { %18 = vsyncadd [#allocation4], 3840  ;;  %s717_s18 = smov [#allocation3]   ;;  %s645_s22 = scalar_lea.hbm %s828_s0, 256 }
   0x4   :  { %s19_s19 = sshll.u32 %s717_s18, 4  ;;  %p646_p0 = scmp.ne.s32.totalorder %s828_s0, %s645_s22  ;;  %s20_s19 = int_to_ptr.vmem [resolvable:$true] %s19_s19 }
   0x5   :  { %p649_p1 = scmp.lt.u32.totalorder %s645_s22, %s828_s0 }
   0x7   :  { %p651_p2 = pnand %p649_p1, %p646_p0 }
   0x9   :  { %654 = shalt.err (!%p651_p2)
}
   0xa   :  { %s655_s27 = scalar_lea.vmem %s20_s19, 256  ;;  %s659_s28 = scalar_lea.vmem %s20_s19, 4096 }
   0xb   :  { %p656_p3 = scmp.ne.s32.totalorder %s20_s19, %s655_s27  ;;  %p660_p4 = scmp.lt.s32.totalorder %s20_s19, %s20_s19 }
   0xc   :  { %p661_p5 = scmp.lt.s32.totalorder %s659_s28, %s655_s27 }
   0xe   :  { %p662_p6 = por %p661_p5, %p660_p4 }
  0x10   :  { %p663_p7 = pnand %p662_p6, %p656_p3 }
  0x12   :  { %666 = shalt.err (!%p663_p7)
}
  0x13   :  { %s718_s29 = smov 256   ;;  %s719_s30 = smov 16  }
  0x14   :  { %25 = dma.hbm_to_vmem [thread:$0]  %s828_s0, 256, %s20_s19, [#allocation4], %s718_s29, %s718_s29, %s719_s30  }
  0x15   :  { %s720_s8 = smov [#allocation6]   ;;  %s667_s12 = scalar_lea.hbm %s829_s1, 2048 }
  0x16   :  { %s31_s9 = sshll.u32 %s720_s8, 4  ;;  %p668_p8 = scmp.ne.s32.totalorder %s829_s1, %s667_s12  ;;  %s32_s9 = int_to_ptr.vmem [resolvable:$true] %s31_s9 }
  0x17   :  { %p671_p9 = scmp.lt.u32.totalorder %s667_s12, %s829_s1 }
  0x19   :  { %p673_p10 = pnand %p671_p9, %p668_p8 }
  0x1b   :  { %676 = shalt.err (!%p673_p10)
}
  0x1c   :  { %s677_s17 = scalar_lea.vmem %s32_s9, 2048  ;;  %p682_p12 = scmp.lt.s32.totalorder %s32_s9, %s32_s9 }
  0x1d   :  { %p678_p11 = scmp.ne.s32.totalorder %s32_s9, %s677_s17  ;;  %p683_p13 = scmp.lt.s32.totalorder %s677_s17, %s677_s17 }
  0x1f   :  { %p684_p0 = por %p683_p13, %p682_p12 }
  0x21   :  { %p685_p1 = pnand %p684_p0, %p678_p11 }
  0x23   :  { %688 = shalt.err (!%p685_p1)
}
  0x24   :  { %s721_s0 = smov 64   ;;  %s722_s18 = smov 4  }
  0x25   :  { %37 = dma.hbm_to_vmem [thread:$0]  %s829_s1, 2048, %s32_s9, [#allocation7], %s721_s0, %s721_s0, %s722_s18  }
  0x26   :  { %711 = dma.done.wait [#allocation4], 4096  }
  0x27   :  { %712 = vsyncadd [#allocation4], 4294963200 }
  0x28   :  { %713 = dma.done.wait [#allocation7], 2048  }
  0x29   :  { %714 = vsyncadd [#allocation7], 4294965248  ;;  %v625_v0 = vld [vmem:[#allocation6 + $0x40] sm:$0xff]   ;;  %v627_v2 = vld [vmem:[#allocation6 + $0x48] sm:$0xff]   ;;  %vm724_vm0 = vmmov 0   ;;  %s726_s25 = smov [#allocation8]  }
  0x2a   :  { %v626_v1 = vld [vmem:[#allocation6] sm:$0xff]   ;;  %475 = vmatprep.subr.bf16.mxu0 %v625_v0  ;;  %v628_v3 = vld [vmem:[#allocation6 + $0x8] sm:$0xff]   ;;  %v629_v4 = vld [vmem:[#allocation6 + $0x50] sm:$0xff]   ;;  %v723_v0 = vmov 0.0|0.0   ;;  %s448_s26 = sshll.u32 %s726_s25, 4  ;;  %s449_s26 = int_to_ptr.vmem [resolvable:$true] %s448_s26 }
  0x2b   :  { %476 = vmatpush3.bf16.msra.mxu0 %v626_v1  ;;  %v630_v5 = vld [vmem:[#allocation6 + $0x10] sm:$0xff]   ;;  %v631_v6 = vld [vmem:[#allocation6 + $0x58] sm:$0xff]   ;;  %v633_v8 = vld [vmem:[#allocation6 + $0x60] sm:$0xff]   ;;  %591 = vmatprep.subr.bf16.mxu1 %v723_v0  ;;  %v725_v1 = vmov 0.0   ;;  %s693_s27 = scalar_lea.vmem %s449_s26, 32  ;;  %p694_p3 = scmp.lt.s32.totalorder %s449_s26, %s449_s26 }
  0x2c   :  { %477 = vmatprep.subr.bf16.mxu0 %v627_v2  ;;  %v632_v7 = vld [vmem:[#allocation6 + $0x18] sm:$0xff]   ;;  %v634_v9 = vld [vmem:[#allocation6 + $0x20] sm:$0xff]   ;;  %v635_v10 = vld [vmem:[#allocation6 + $0x68] sm:$0xff]   ;;  %588 = vmatprep.mubr.msk.f32.mxu1 %vm724_vm0, %v725_v1 }
  0x2d   :  { %v52_v11 = vld [vmem:[#allocation3 + $0x8] sm:$0xff]  ;;  %v54_v12 = vld [vmem:[#allocation3 + $0x18] sm:$0xff]  ;;  %v637_v15 = vld [vmem:[#allocation6 + $0x70] sm:$0xff]  }
  0x2e   :  { %v84_v13 = vpack.c.bf16 %v54_v12, %v52_v11  ;;  %v636_v14 = vld [vmem:[#allocation6 + $0x28] sm:$0xff]   ;;  %v638_v16 = vld [vmem:[#allocation6 + $0x30] sm:$0xff]   ;;  %v639_v17 = vld [vmem:[#allocation6 + $0x78] sm:$0xff]  }
  0x2f   :  { %478 = vmatpush3.bf16.msra.mxu0 %v628_v3  ;;  %v640_v18 = vld [vmem:[#allocation6 + $0x38] sm:$0xff]   ;;  %v51_v19 = vld [vmem:[#allocation3] sm:$0xff]  ;;  %v53_v20 = vld [vmem:[#allocation3 + $0x10] sm:$0xff] }
  0x30   :  { %479 = vmatprep.subr.bf16.mxu0 %v629_v4  ;;  %266 = vmatprep.mubr.bf16.mxu0 %v84_v13  ;;  %v56_v21 = vld [vmem:[#allocation3 + $0x28] sm:$0xff]  ;;  %v58_v22 = vld [vmem:[#allocation3 + $0x38] sm:$0xff]  ;;  %v83_v23 = vpack.c.bf16 %v53_v20, %v51_v19  ;;  %v55_v25 = vld [vmem:[#allocation3 + $0x20] sm:$0xff] }
  0x31   :  { %v86_v24 = vpack.c.bf16 %v58_v22, %v56_v21  ;;  %v57_v26 = vld [vmem:[#allocation3 + $0x30] sm:$0xff]  ;;  %v60_v27 = vld [vmem:[#allocation3 + $0x48] sm:$0xff]  ;;  %v62_v28 = vld [vmem:[#allocation3 + $0x58] sm:$0xff] }
  0x32   :  { %v85_v29 = vpack.c.bf16 %v57_v26, %v55_v25  ;;  %v88_v30 = vpack.c.bf16 %v62_v28, %v60_v27  ;;  %v59_v31 = vld [vmem:[#allocation3 + $0x40] sm:$0xff]  ;;  %v61_v32 = vld [vmem:[#allocation3 + $0x50] sm:$0xff]  ;;  %v64_v33 = vld [vmem:[#allocation3 + $0x68] sm:$0xff] }
  0x33   :  { %480 = vmatpush3.bf16.msra.mxu0 %v630_v5  ;;  %v66_v34 = vld [vmem:[#allocation3 + $0x78] sm:$0xff]  ;;  %v87_v35 = vpack.c.bf16 %v61_v32, %v59_v31  ;;  %v63_v37 = vld [vmem:[#allocation3 + $0x60] sm:$0xff]  ;;  %v65_v38 = vld [vmem:[#allocation3 + $0x70] sm:$0xff] }
  0x34   :  { %481 = vmatprep.subr.bf16.mxu0 %v631_v6  ;;  %v90_v36 = vpack.c.bf16 %v66_v34, %v64_v33  ;;  %v68_v39 = vld [vmem:[#allocation3 + $0x88] sm:$0xff]  ;;  %v70_v40 = vld [vmem:[#allocation3 + $0x98] sm:$0xff]  ;;  %v89_v41 = vpack.c.bf16 %v65_v38, %v63_v37  ;;  %v67_v43 = vld [vmem:[#allocation3 + $0x80] sm:$0xff] }
  0x35   :  { %v92_v42 = vpack.c.bf16 %v70_v40, %v68_v39  ;;  %v69_v44 = vld [vmem:[#allocation3 + $0x90] sm:$0xff]  ;;  %v72_v45 = vld [vmem:[#allocation3 + $0xa8] sm:$0xff]  ;;  %v74_v46 = vld [vmem:[#allocation3 + $0xb8] sm:$0xff] }
  0x36   :  { %v91_v47 = vpack.c.bf16 %v69_v44, %v67_v43  ;;  %v94_v48 = vpack.c.bf16 %v74_v46, %v72_v45  ;;  %v71_v49 = vld [vmem:[#allocation3 + $0xa0] sm:$0xff]  ;;  %v73_v50 = vld [vmem:[#allocation3 + $0xb0] sm:$0xff]  ;;  %v76_v51 = vld [vmem:[#allocation3 + $0xc8] sm:$0xff] }
  0x37   :  { %482 = vmatpush3.bf16.msra.mxu0 %v632_v7  ;;  %v78_v52 = vld [vmem:[#allocation3 + $0xd8] sm:$0xff]  ;;  %v93_v53 = vpack.c.bf16 %v73_v50, %v71_v49  ;;  %v75_v55 = vld [vmem:[#allocation3 + $0xc0] sm:$0xff]  ;;  %v77_v56 = vld [vmem:[#allocation3 + $0xd0] sm:$0xff] }
  0x38   :  { %483 = vmatprep.subr.bf16.mxu0 %v633_v8  ;;  %v96_v54 = vpack.c.bf16 %v78_v52, %v76_v51  ;;  %v80_v57 = vld [vmem:[#allocation3 + $0xe8] sm:$0xff]  ;;  %v82_v58 = vld [vmem:[#allocation3 + $0xf8] sm:$0xff]  ;;  %v95_v59 = vpack.c.bf16 %v77_v56, %v75_v55  ;;  %v79_v61 = vld [vmem:[#allocation3 + $0xe0] sm:$0xff] }
  0x39   :  { %v98_v60 = vpack.c.bf16 %v82_v58, %v80_v57  ;;  %v81_v62 = vld [vmem:[#allocation3 + $0xf0] sm:$0xff]  ;;  %v785_v3 = vld [vmem:[%s830_s2] ss:$0 sm:$0xff] }
  0x3a   :  { %v97_v63 = vpack.c.bf16 %v81_v62, %v79_v61 }
  0x3b   :  { %484 = vmatpush3.bf16.msra.mxu0 %v634_v9 }
  0x3c   :  { %485 = vmatprep.subr.bf16.mxu0 %v635_v10 }
  0x3f   :  { %486 = vmatpush3.bf16.msra.mxu0 %v636_v14 }
  0x40   :  { %487 = vmatprep.subr.bf16.mxu0 %v637_v15 }
  0x43   :  { %488 = vmatpush3.bf16.msra.mxu0 %v638_v16 }
  0x44   :  { %489 = vmatprep.subr.bf16.mxu0 %v639_v17 }
  0x47   :  { %490 = vmatpush3.bf16.msra.mxu0 %v640_v18 }
  0x4a   :  { %267 = vmatmul.mubr.bf16.vlgmr.msra.gmra.mrb[0].mxu0 %v83_v23 }
  0x4b   :  { %274 = vmatprep.mubr.bf16.mxu0 %v86_v24 }
  0x52   :  { %275 = vmatmul.mubr.bf16.gmra.mrb[4].mxu0 %v85_v29 }
  0x53   :  { %282 = vmatprep.mubr.bf16.mxu0 %v88_v30 }
  0x5a   :  { %283 = vmatmul.mubr.bf16.gmra.mrb[8].mxu0 %v87_v35 }
  0x5b   :  { %290 = vmatprep.mubr.bf16.mxu0 %v90_v36 }
  0x62   :  { %291 = vmatmul.mubr.bf16.gmra.mrb[12].mxu0 %v89_v41 }
  0x63   :  { %298 = vmatprep.mubr.bf16.mxu0 %v92_v42 }
  0x6a   :  { %299 = vmatmul.mubr.bf16.gmra.mrb[16].mxu0 %v91_v47 }
  0x6b   :  { %306 = vmatprep.mubr.bf16.mxu0 %v94_v48 }
  0x72   :  { %307 = vmatmul.mubr.bf16.gmra.mrb[20].mxu0 %v93_v53 }
  0x73   :  { %314 = vmatprep.mubr.bf16.mxu0 %v96_v54 }
  0x7a   :  { %315 = vmatmul.mubr.bf16.gmra.mrb[24].mxu0 %v95_v59 }
  0x7b   :  { %322 = vmatprep.mubr.bf16.mxu0 %v98_v60 }
  0x82   :  { %323 = vmatmul.mubr.bf16.gmra.mrb[28].mxu0 %v97_v63 }
 0x11d   :  { %v491_v2 = vpop.f32.mrb[0].mxu0 }
 0x11e   :  { %v492_v4 = vpop.f32.mrb[1].mxu0 }
 0x11f   :  { %v493_v5 = vadd.f32 %v492_v4, %v491_v2  ;;  %v494_v6 = vpop.f32.mrb[2].mxu0 }
 0x120   :  { %v495_v7 = vpop.f32.mrb[3].mxu0 }
 0x121   :  { %v269_v8 = vadd.f32 %v493_v5, %v785_v3  ;;  %v496_v9 = vadd.f32 %v495_v7, %v494_v6 }
 0x123   :  { %v331_v10 = vmul.f32 0.01, %v269_v8  ;;  %v272_v11 = vadd.f32 %v496_v9, %v785_v3 }
 0x125   :  { %v332_v12 = vmul.f32 0.01, %v272_v11  ;;  %v497_v13 = vpop.f32.mrb[4].mxu0  ;;  %v347_v17 = vmax.f32 %v269_v8, %v331_v10 }
 0x126   :  { %v498_v14 = vpop.f32.mrb[5].mxu0 }
 0x127   :  { %v499_v15 = vadd.f32 %v498_v14, %v497_v13  ;;  %v500_v16 = vpop.f32.mrb[6].mxu0  ;;  %v348_v18 = vmax.f32 %v272_v11, %v332_v12 }
 0x128   :  { %v501_v19 = vpop.f32.mrb[7].mxu0 }
 0x129   :  { %v277_v20 = vadd.f32 %v499_v15, %v785_v3  ;;  %v502_v21 = vadd.f32 %v501_v19, %v500_v16  ;;  %v592_v22 = vpack.c.bf16 %v348_v18, %v347_v17 }
 0x12b   :  { %v333_v23 = vmul.f32 0.01, %v277_v20  ;;  %v280_v24 = vadd.f32 %v502_v21, %v785_v3  ;;  %593 = vmatpush3.bf16.xpose.msra.mxu1 %v592_v22 }
 0x12c   :  { %594 = vmatprep.subr.bf16.mxu1 %v723_v0 }
 0x12d   :  { %v334_v25 = vmul.f32 0.01, %v280_v24  ;;  %v503_v26 = vpop.f32.mrb[8].mxu0  ;;  %v349_v28 = vmax.f32 %v277_v20, %v333_v23 }
 0x12e   :  { %v504_v27 = vpop.f32.mrb[9].mxu0 }
 0x12f   :  { %v350_v29 = vmax.f32 %v280_v24, %v334_v25  ;;  %v505_v30 = vadd.f32 %v504_v27, %v503_v26  ;;  %v506_v31 = vpop.f32.mrb[10].mxu0 }
 0x130   :  { %v507_v32 = vpop.f32.mrb[11].mxu0 }
 0x131   :  { %v285_v33 = vadd.f32 %v505_v30, %v785_v3  ;;  %v508_v34 = vadd.f32 %v507_v32, %v506_v31  ;;  %v595_v35 = vpack.c.bf16 %v350_v29, %v349_v28 }
 0x133   :  { %v335_v36 = vmul.f32 0.01, %v285_v33  ;;  %v288_v37 = vadd.f32 %v508_v34, %v785_v3  ;;  %596 = vmatpush3.bf16.xpose.msra.mxu1 %v595_v35 }
 0x134   :  { %597 = vmatprep.subr.bf16.mxu1 %v723_v0 }
 0x135   :  { %v336_v38 = vmul.f32 0.01, %v288_v37  ;;  %v509_v39 = vpop.f32.mrb[12].mxu0  ;;  %v351_v41 = vmax.f32 %v285_v33, %v335_v36 }
 0x136   :  { %v510_v40 = vpop.f32.mrb[13].mxu0 }
 0x137   :  { %v352_v42 = vmax.f32 %v288_v37, %v336_v38  ;;  %v511_v43 = vadd.f32 %v510_v40, %v509_v39  ;;  %v512_v44 = vpop.f32.mrb[14].mxu0 }
 0x138   :  { %v513_v45 = vpop.f32.mrb[15].mxu0 }
 0x139   :  { %v293_v46 = vadd.f32 %v511_v43, %v785_v3  ;;  %v514_v47 = vadd.f32 %v513_v45, %v512_v44  ;;  %v598_v48 = vpack.c.bf16 %v352_v42, %v351_v41  ;;  %v363_v45 = vld [vmem:[%s831_s3] sm:$0x1]  ;;  %s689_s3 = scalar_lea.vmem %s449_s26, 16 }
 0x13a   :  { %p690_p2 = scmp.ne.s32.totalorder %s449_s26, %s689_s3  ;;  %p695_p4 = scmp.lt.s32.totalorder %s693_s27, %s689_s3 }
 0x13b   :  { %v337_v49 = vmul.f32 0.01, %v293_v46  ;;  %v296_v50 = vadd.f32 %v514_v47, %v785_v3  ;;  %599 = vmatpush3.bf16.xpose.msra.mxu1 %v598_v48 }
 0x13c   :  { %600 = vmatprep.subr.bf16.mxu1 %v723_v0  ;;  %p696_p5 = por %p695_p4, %p694_p3 }
 0x13d   :  { %v338_v51 = vmul.f32 0.01, %v296_v50  ;;  %v515_v52 = vpop.f32.mrb[16].mxu0  ;;  %v353_v54 = vmax.f32 %v293_v46, %v337_v49  ;;  %v365_v46 = vstv %s832_s4 }
 0x13e   :  { %v516_v53 = vpop.f32.mrb[17].mxu0  ;;  %p697_p6 = pnand %p696_p5, %p690_p2 }
 0x13f   :  { %v354_v55 = vmax.f32 %v296_v50, %v338_v51  ;;  %v517_v56 = vadd.f32 %v516_v53, %v515_v52  ;;  %v518_v57 = vpop.f32.mrb[18].mxu0 }
 0x140   :  { %v519_v58 = vpop.f32.mrb[19].mxu0 }
 0x141   :  { %v301_v59 = vadd.f32 %v517_v56, %v785_v3  ;;  %v520_v60 = vadd.f32 %v519_v58, %v518_v57  ;;  %v601_v61 = vpack.c.bf16 %v354_v55, %v353_v54 }
 0x143   :  { %v339_v62 = vmul.f32 0.01, %v301_v59  ;;  %v304_v63 = vadd.f32 %v520_v60, %v785_v3  ;;  %602 = vmatpush3.bf16.xpose.msra.mxu1 %v601_v61 }
 0x144   :  { %603 = vmatprep.subr.bf16.mxu1 %v723_v0 }
 0x145   :  { %v340_v1 = vmul.f32 0.01, %v304_v63  ;;  %v521_v2 = vpop.f32.mrb[20].mxu0  ;;  %v355_v5 = vmax.f32 %v301_v59, %v339_v62 }
 0x146   :  { %v522_v4 = vpop.f32.mrb[21].mxu0 }
 0x147   :  { %v356_v6 = vmax.f32 %v304_v63, %v340_v1  ;;  %v523_v7 = vadd.f32 %v522_v4, %v521_v2  ;;  %v524_v8 = vpop.f32.mrb[22].mxu0 }
 0x148   :  { %v525_v9 = vpop.f32.mrb[23].mxu0 }
 0x149   :  { %v309_v10 = vadd.f32 %v523_v7, %v785_v3  ;;  %v526_v11 = vadd.f32 %v525_v9, %v524_v8  ;;  %v604_v12 = vpack.c.bf16 %v356_v6, %v355_v5 }
 0x14b   :  { %v341_v13 = vmul.f32 0.01, %v309_v10  ;;  %v312_v14 = vadd.f32 %v526_v11, %v785_v3  ;;  %605 = vmatpush3.bf16.xpose.msra.mxu1 %v604_v12 }
 0x14c   :  { %606 = vmatprep.subr.bf16.mxu1 %v723_v0 }
 0x14d   :  { %v342_v15 = vmul.f32 0.01, %v312_v14  ;;  %v527_v16 = vpop.f32.mrb[24].mxu0  ;;  %v357_v18 = vmax.f32 %v309_v10, %v341_v13 }
 0x14e   :  { %v528_v17 = vpop.f32.mrb[25].mxu0 }
 0x14f   :  { %v358_v19 = vmax.f32 %v312_v14, %v342_v15  ;;  %v529_v20 = vadd.f32 %v528_v17, %v527_v16  ;;  %v530_v21 = vpop.f32.mrb[26].mxu0 }
 0x150   :  { %v531_v22 = vpop.f32.mrb[27].mxu0 }
 0x151   :  { %v317_v23 = vadd.f32 %v529_v20, %v785_v3  ;;  %v532_v24 = vadd.f32 %v531_v22, %v530_v21  ;;  %v607_v25 = vpack.c.bf16 %v358_v19, %v357_v18 }
 0x153   :  { %v343_v26 = vmul.f32 0.01, %v317_v23  ;;  %v320_v27 = vadd.f32 %v532_v24, %v785_v3  ;;  %608 = vmatpush3.bf16.xpose.msra.mxu1 %v607_v25 }
 0x154   :  { %609 = vmatprep.subr.bf16.mxu1 %v723_v0 }
 0x155   :  { %v344_v28 = vmul.f32 0.01, %v320_v27  ;;  %v533_v29 = vpop.f32.mrb[28].mxu0  ;;  %v359_v31 = vmax.f32 %v317_v23, %v343_v26 }
 0x156   :  { %v534_v30 = vpop.f32.mrb[29].mxu0 }
 0x157   :  { %v360_v32 = vmax.f32 %v320_v27, %v344_v28  ;;  %v535_v33 = vadd.f32 %v534_v30, %v533_v29  ;;  %v536_v34 = vpop.f32.mrb[30].mxu0 }
 0x158   :  { %v537_v35 = vpop.f32.mrb[31].mxu0 }
 0x159   :  { %v325_v36 = vadd.f32 %v535_v33, %v785_v3  ;;  %v538_v37 = vadd.f32 %v537_v35, %v536_v34  ;;  %v610_v38 = vpack.c.bf16 %v360_v32, %v359_v31 }
 0x15b   :  { %v345_v39 = vmul.f32 0.01, %v325_v36  ;;  %v328_v40 = vadd.f32 %v538_v37, %v785_v3  ;;  %611 = vmatpush3.bf16.xpose.msra.mxu1 %v610_v38 }
 0x15c   :  { %612 = vmatprep.subr.bf16.mxu1 %v723_v0 }
 0x15d   :  { %v346_v41 = vmul.f32 0.01, %v328_v40  ;;  %v361_v42 = vmax.f32 %v325_v36, %v345_v39 }
 0x15f   :  { %v362_v43 = vmax.f32 %v328_v40, %v346_v41 }
 0x161   :  { %v613_v44 = vpack.c.bf16 %v362_v43, %v361_v42 }
 0x163   :  { %614 = vmatpush3.bf16.xpose.msra.mxu1 %v613_v44 }
 0x16a   :  { %589 = vmatmul.mubr.f32.vlgmr.msra.gmra.mrb[0].mxu1 %v363_v45 }
 0x23d   :  { %v432_v47 = vpop.f32.mrb[0].mxu1 }
 0x23e   :  { %v433_v48 = vadd.f32 %v432_v47, %v365_v46  ;;  %v590_v3 = vpop.f32.mrb[1].mxu1 }
 0x240   :  { %v436_v49 = vsub.f32 0.0, %v433_v48 }
 0x242   :  { %v437_v50 = vmul.f32 1.442695, %v436_v49 }
 0x244   :  { %641 = vpow2.f32 %v437_v50 }
 0x24e   :  { %v642_v0 = vpop.eup %641 }
 0x24f   :  { %v439_v51 = vadd.f32 1.0, %v642_v0 }
 0x251   :  { %643 = vrcp.f32 %v439_v51 }
 0x25b   :  { %v644_v52 = vpop.eup %643 }
 0x25c   :  { %441 = vst [vmem:[#allocation8] sm:$0x1] %v644_v52 }
 0x25d   :  { %700 = shalt.err (!%p697_p6)
}
 0x25e   :  { %s701_s29 = scalar_lea.hbm %s833_s5, 16 }
 0x25f   :  { %p702_p7 = scmp.ne.s32.totalorder %s833_s5, %s701_s29  ;;  %p705_p8 = scmp.lt.u32.totalorder %s701_s29, %s833_s5 }
 0x261   :  { %p707_p9 = pnand %p705_p8, %p702_p7 }
 0x263   :  { %710 = shalt.err (!%p707_p9)
}
 0x264   :  { %451 = dma.vmem_to_hbm [thread:$0]  %s449_s26, 16, %s833_s5, [#allocation5]  }
 0x265   :  { %715 = dma.done.wait [#allocation5], 16  }
 0x266   :  { %716 = vsyncadd [#allocation5], 4294967280 }
 0x267   :  { %455 = vsyncpa [#allocation4], 1 }
 0x268   :  { %456 = vsyncpa [#allocation7], 1 }
 0x269   :  { %457 = vsyncpa [#allocation5], 1 }

</bundles_post_ra>
